<compile_context>
chip_gen: v7x
topology: tpu7x:2x2x1
jax: 0.10.0
libtpu: 0.0.40
codegen_flags: <defaults>
</compile_context>

<pallas_src>
import functools

import jax
import jax.numpy as jnp
from jax.experimental import pallas as pl
from jax.experimental.pallas import tpu as pltpu


N_PAD = 128   # 10 -> 128: lane-dense logits store (sliced back outside)


# ------------------------- Pallas kernel -------------------------

def _fused_model_kernel(x_ref, w_emb_ref, b_emb_ref, w_cls_ref, b_cls_ref, o_ref):
    """Fused embedding + classifier, single launch, everything in VMEM.

    x_ref     : (C, B, L)     f32  channel-major so x_ref[c] is a clean 2-D tile
    w_emb_ref : (L, H)        f32
    b_emb_ref : (1, H)        f32
    w_cls_ref : (C, H, N_PAD) f32  classifier weight split per channel,
                                   cols >= num_classes are zero
    b_cls_ref : (1, N_PAD)    f32
    o_ref     : (B, N_PAD)    f32  lane-dense logits
    """
    C = x_ref.shape[0]
    acc = jnp.zeros(o_ref.shape, jnp.float32)
    for c in range(C):  # static unroll (C = 3)
        # (B, L) @ (L, H) + (1, H) -> (B, H); stays in registers/VMEM
        emb_c = (
            jnp.dot(x_ref[c], w_emb_ref[...], preferred_element_type=jnp.float32)
            + b_emb_ref[...]
        )
        # flatten-free classifier contribution of channel c: (B, H) @ (H, N_PAD)
        acc = acc + jnp.dot(emb_c, w_cls_ref[c],
                            preferred_element_type=jnp.float32)
    o_ref[...] = (acc + b_cls_ref[...]).astype(o_ref.dtype)


# ------------------------- wrapper -------------------------

def fused_forward(x, w_emb, b_emb, w_cls_split, b_cls_pad, *, num_classes):
    """x: (B, C, L) -> logits (B, num_classes). Single pallas_call."""
    x = x.astype(jnp.float32)                       # matches torch x.float()
    xt = jnp.transpose(x, (1, 0, 2))                # (C, B, L) channel-major
    B = x.shape[0]

    vmem = pl.BlockSpec(memory_space=pltpu.MemorySpace.VMEM)
    logits_pad = pl.pallas_call(
        _fused_model_kernel,
        out_shape=jax.ShapeDtypeStruct((B, N_PAD), jnp.float32),
        in_specs=[vmem, vmem, vmem, vmem, vmem],
        out_specs=vmem,
    )(xt, w_emb, b_emb, w_cls_split, b_cls_pad)
    return logits_pad[:, :num_classes]


# ------------------------- model -------------------------

class FullModelPallas:
    """JAX/Pallas port of FullModel.

    embedding : Linear(L=385 -> H=32) applied to each of the C=3 channel rows
                (input_size = C*H, matching the (1, 3, 385) dummy probe used
                by the original module to size the classifier).
    classifier: Linear(C*H -> num_classes) on the flattened embedding output.
    """

    def __init__(self, key, seq_len=385, channels=3, hidden=32, num_classes=10):
        assert num_classes <= N_PAD
        k1, k2, k3, k4 = jax.random.split(key, 4)
        self.seq_len = seq_len
        self.channels = channels
        self.hidden = hidden
        self.num_classes = num_classes

        # deterministic synthetic parameters (no checkpoint load)
        self.w_emb = (jax.random.normal(k1, (seq_len, hidden), jnp.float32)
                      * (1.0 / jnp.sqrt(seq_len)))
        self.b_emb = jax.random.normal(k2, (1, hidden), jnp.float32) * 0.01
        input_size = channels * hidden            # numel of embedding(dummy)
        self.w_cls = (jax.random.normal(k3, (input_size, num_classes), jnp.float32)
                      * (1.0 / jnp.sqrt(input_size)))
        self.b_cls = jax.random.normal(k4, (1, num_classes), jnp.float32) * 0.01

        # static, one-time re-layout / padding for MXU- and lane-friendly shapes
        self.w_cls_split = jnp.pad(
            self.w_cls.reshape(channels, hidden, num_classes),
            ((0, 0), (0, 0), (0, N_PAD - num_classes)))
        self.b_cls_pad = jnp.pad(self.b_cls, ((0, 0), (0, N_PAD - num_classes)))

        self._fwd = jax.jit(
            functools.partial(fused_forward, num_classes=num_classes))

    def __call__(self, x):
        return self._fwd(x, self.w_emb, self.b_emb,
                         self.w_cls_split, self.b_cls_pad)

    # pure-JAX reference (unfused, unpadded) for correctness checking
    def reference(self, x):
        x = x.astype(jnp.float32)
        B, C, L = x.shape
        emb = x.reshape(B * C, L) @ self.w_emb + self.b_emb      # (B*C, H)
        flat = emb.reshape(B, C * self.hidden)                   # (B, C*H)
        return flat @ self.w_cls + self.b_cls                    # (B, num_classes)


# ------------------------- main -------------------------

if __name__ == "__main__":
    key = jax.random.PRNGKey(0)
    k_param, k_data = jax.random.split(key)

    B, C, L = 2, 3, 385          # matches the (N, 3, 385) input convention
    hidden, num_classes = 32, 10

    model = FullModelPallas(k_param, seq_len=L, channels=C,
                            hidden=hidden, num_classes=num_classes)

    x = jax.random.normal(k_data, (B, C, L), jnp.float32)

    out = model(x)
    jax.block_until_ready(out)

    assert out.shape == (B, num_classes), out.shape
    assert out.dtype == jnp.float32, out.dtype

    ref = model.reference(x)
    assert jnp.allclose(out, ref, rtol=1e-4, atol=1e-4), \
        float(jnp.max(jnp.abs(out - ref)))

    print("KERNEL_OK")
</pallas_src>

<mosaic_0001>
module attributes {stable_mosaic.version = 11 : i64} {
  func.func @_fused_model_kernel(%arg0: memref<3x2x385xf32, #tpu.memory_space<vmem>>, %arg1: memref<385x32xf32, #tpu.memory_space<vmem>>, %arg2: memref<1x32xf32, #tpu.memory_space<vmem>>, %arg3: memref<3x32x128xf32, #tpu.memory_space<vmem>>, %arg4: memref<1x128xf32, #tpu.memory_space<vmem>>, %arg5: memref<2x128xf32, #tpu.memory_space<vmem>>) attributes {dimension_semantics = [], scalar_prefetch = 0 : i64, scratch_operands = 0 : i64, tpu.core_type = #tpu.core_type<tc>} {
    %cst = arith.constant 0.000000e+00 : f32
    %0 = vector.broadcast %cst : f32 to vector<2x128xf32>
    %c0 = arith.constant 0 : index
    %c0_0 = arith.constant 0 : index
    %c0_1 = arith.constant 0 : index
    %1 = vector.load %arg0[%c0, %c0_0, %c0_1] : memref<3x2x385xf32, #tpu.memory_space<vmem>>, vector<1x2x385xf32>
    %2 = vector.shape_cast %1 : vector<1x2x385xf32> to vector<2x385xf32>
    %c0_2 = arith.constant 0 : index
    %c0_3 = arith.constant 0 : index
    %3 = vector.load %arg1[%c0_2, %c0_3] : memref<385x32xf32, #tpu.memory_space<vmem>>, vector<385x32xf32>
    %cst_4 = arith.constant dense<0.000000e+00> : vector<2x32xf32>
    %4 = tpu.matmul %2, %3, %cst_4 {dimension_numbers = #tpu.dot_dimension_numbers<[1], [0], [0], [1], [0, 0, 1, 1], [], []>} : vector<2x385xf32>, vector<385x32xf32>, vector<2x32xf32> -> vector<2x32xf32>
    %c0_5 = arith.constant 0 : index
    %c0_6 = arith.constant 0 : index
    %5 = vector.load %arg2[%c0_5, %c0_6] : memref<1x32xf32, #tpu.memory_space<vmem>>, vector<1x32xf32>
    %6 = vector.broadcast %5 : vector<1x32xf32> to vector<2x32xf32>
    %7 = arith.addf %4, %6 : vector<2x32xf32>
    %c0_7 = arith.constant 0 : index
    %c0_8 = arith.constant 0 : index
    %c0_9 = arith.constant 0 : index
    %8 = vector.load %arg3[%c0_7, %c0_8, %c0_9] : memref<3x32x128xf32, #tpu.memory_space<vmem>>, vector<1x32x128xf32>
    %9 = vector.shape_cast %8 : vector<1x32x128xf32> to vector<32x128xf32>
    %cst_10 = arith.constant dense<0.000000e+00> : vector<2x128xf32>
    %10 = tpu.matmul %7, %9, %cst_10 {dimension_numbers = #tpu.dot_dimension_numbers<[1], [0], [0], [1], [0, 0, 1, 1], [], []>} : vector<2x32xf32>, vector<32x128xf32>, vector<2x128xf32> -> vector<2x128xf32>
    %11 = arith.addf %0, %10 : vector<2x128xf32>
    %c1 = arith.constant 1 : index
    %c0_11 = arith.constant 0 : index
    %c0_12 = arith.constant 0 : index
    %12 = vector.load %arg0[%c1, %c0_11, %c0_12] : memref<3x2x385xf32, #tpu.memory_space<vmem>>, vector<1x2x385xf32>
    %13 = vector.shape_cast %12 : vector<1x2x385xf32> to vector<2x385xf32>
    %c0_13 = arith.constant 0 : index
    %c0_14 = arith.constant 0 : index
    %14 = vector.load %arg1[%c0_13, %c0_14] : memref<385x32xf32, #tpu.memory_space<vmem>>, vector<385x32xf32>
    %cst_15 = arith.constant dense<0.000000e+00> : vector<2x32xf32>
    %15 = tpu.matmul %13, %14, %cst_15 {dimension_numbers = #tpu.dot_dimension_numbers<[1], [0], [0], [1], [0, 0, 1, 1], [], []>} : vector<2x385xf32>, vector<385x32xf32>, vector<2x32xf32> -> vector<2x32xf32>
    %c0_16 = arith.constant 0 : index
    %c0_17 = arith.constant 0 : index
    %16 = vector.load %arg2[%c0_16, %c0_17] : memref<1x32xf32, #tpu.memory_space<vmem>>, vector<1x32xf32>
    %17 = vector.broadcast %16 : vector<1x32xf32> to vector<2x32xf32>
    %18 = arith.addf %15, %17 : vector<2x32xf32>
    %c1_18 = arith.constant 1 : index
    %c0_19 = arith.constant 0 : index
    %c0_20 = arith.constant 0 : index
    %19 = vector.load %arg3[%c1_18, %c0_19, %c0_20] : memref<3x32x128xf32, #tpu.memory_space<vmem>>, vector<1x32x128xf32>
    %20 = vector.shape_cast %19 : vector<1x32x128xf32> to vector<32x128xf32>
    %cst_21 = arith.constant dense<0.000000e+00> : vector<2x128xf32>
    %21 = tpu.matmul %18, %20, %cst_21 {dimension_numbers = #tpu.dot_dimension_numbers<[1], [0], [0], [1], [0, 0, 1, 1], [], []>} : vector<2x32xf32>, vector<32x128xf32>, vector<2x128xf32> -> vector<2x128xf32>
    %22 = arith.addf %11, %21 : vector<2x128xf32>
    %c2 = arith.constant 2 : index
    %c0_22 = arith.constant 0 : index
    %c0_23 = arith.constant 0 : index
    %23 = vector.load %arg0[%c2, %c0_22, %c0_23] : memref<3x2x385xf32, #tpu.memory_space<vmem>>, vector<1x2x385xf32>
    %24 = vector.shape_cast %23 : vector<1x2x385xf32> to vector<2x385xf32>
    %c0_24 = arith.constant 0 : index
    %c0_25 = arith.constant 0 : index
    %25 = vector.load %arg1[%c0_24, %c0_25] : memref<385x32xf32, #tpu.memory_space<vmem>>, vector<385x32xf32>
    %cst_26 = arith.constant dense<0.000000e+00> : vector<2x32xf32>
    %26 = tpu.matmul %24, %25, %cst_26 {dimension_numbers = #tpu.dot_dimension_numbers<[1], [0], [0], [1], [0, 0, 1, 1], [], []>} : vector<2x385xf32>, vector<385x32xf32>, vector<2x32xf32> -> vector<2x32xf32>
    %c0_27 = arith.constant 0 : index
    %c0_28 = arith.constant 0 : index
    %27 = vector.load %arg2[%c0_27, %c0_28] : memref<1x32xf32, #tpu.memory_space<vmem>>, vector<1x32xf32>
    %28 = vector.broadcast %27 : vector<1x32xf32> to vector<2x32xf32>
    %29 = arith.addf %26, %28 : vector<2x32xf32>
    %c2_29 = arith.constant 2 : index
    %c0_30 = arith.constant 0 : index
    %c0_31 = arith.constant 0 : index
    %30 = vector.load %arg3[%c2_29, %c0_30, %c0_31] : memref<3x32x128xf32, #tpu.memory_space<vmem>>, vector<1x32x128xf32>
    %31 = vector.shape_cast %30 : vector<1x32x128xf32> to vector<32x128xf32>
    %cst_32 = arith.constant dense<0.000000e+00> : vector<2x128xf32>
    %32 = tpu.matmul %29, %31, %cst_32 {dimension_numbers = #tpu.dot_dimension_numbers<[1], [0], [0], [1], [0, 0, 1, 1], [], []>} : vector<2x32xf32>, vector<32x128xf32>, vector<2x128xf32> -> vector<2x128xf32>
    %33 = arith.addf %22, %32 : vector<2x128xf32>
    %c0_33 = arith.constant 0 : index
    %c0_34 = arith.constant 0 : index
    %34 = vector.load %arg4[%c0_33, %c0_34] : memref<1x128xf32, #tpu.memory_space<vmem>>, vector<1x128xf32>
    %35 = vector.broadcast %34 : vector<1x128xf32> to vector<2x128xf32>
    %36 = arith.addf %33, %35 : vector<2x128xf32>
    %c0_35 = arith.constant 0 : index
    %c0_36 = arith.constant 0 : index
    %37 = vector.load %arg5[%c0_35, %c0_36] : memref<2x128xf32, #tpu.memory_space<vmem>>, vector<2x128xf32>
    tpu.vector_store %arg5[%c0_35, %c0_36], %36 {strides = array<i32>} : memref<2x128xf32, #tpu.memory_space<vmem>>, vector<2x128xf32>,
    return
  }
}

</mosaic_0001>

<bundles_post_ra>
// kernel: fused_forward.1
= control target key start
LH: loop header
LB: loop body
LE: loop exit
PB: predicated region body
PF: predicated region fallthrough
CT: control target
= control target key end

     0   :  { %v1226_v4 = vmov 0.0|0.0   ;;  %v1227_v26 = vmov 1983009808   ;;  %v83_v28 = vlaneseq  ;;  %s1657_s0 = inlined_call_operand.vmem [shape: f32[3,2,385], index: 0, kind: input, shape index: {}]   ;;  %s1658_s1 = inlined_call_operand.vmem [shape: f32[385,32], index: 1, kind: input, shape index: {}]   ;;  %s1659_s2 = inlined_call_operand.vmem [shape: f32[1,32], index: 2, kind: input, shape index: {}]   ;;  %s1660_s3 = inlined_call_operand.vmem [shape: f32[3,32,128], index: 3, kind: input, shape index: {}]   ;;  %s1661_s4 = inlined_call_operand.vmem [shape: f32[1,128], index: 4, kind: input, shape index: {}]   ;;  %s1662_s5 = inlined_call_operand.hbm [shape: f32[2,128], index: 5, kind: output, shape index: {}]  }
   0x1   :  { %v38_v0 = vld [vmem:[%s1658_s1 + $0x80] sm:$0xff]  ;;  %v39_v1 = vld [vmem:[%s1658_s1 + $0x88] sm:$0xff]  ;;  %1040 = vmatprep.subr.bf16.mxu1 %v1226_v4  ;;  %v40_v10 = vld [vmem:[%s1658_s1 + $0x90] sm:$0xff]  ;;  %v81_v27 = vunpack.c.l.s4 %v1227_v26 }
   0x2   :  { %v22_v2 = vld [vmem:[%s1658_s1] sm:$0xff]  ;;  %v1270_v3 = vpack.c.bf16 %v39_v1, %v38_v0  ;;  %v23_v5 = vld [vmem:[%s1658_s1 + $0x8] sm:$0xff]  ;;  %v41_v11 = vld [vmem:[%s1658_s1 + $0x98] sm:$0xff]  ;;  %v84_v39 = vshrl.u32 %v83_v28, 7 }
   0x3   :  { %v54_v6 = vld [vmem:[%s1658_s1 + $0x100] sm:$0xff]  ;;  %v55_v7 = vld [vmem:[%s1658_s1 + $0x108] sm:$0xff]  ;;  %v1282_v8 = vpack.c.bf16 %v23_v5, %v22_v2  ;;  %v24_v12 = vld [vmem:[%s1658_s1 + $0x10] sm:$0xff]  ;;  %v1296_v13 = vpack.c.bf16 %v41_v11, %v40_v10  ;;  %v82_v38 = vunpack.c.0.s8 %v81_v27 }
   0x4   :  { %v1284_v9 = vpack.c.bf16 %v55_v7, %v54_v6  ;;  %1009 = vmatprep.subr.bf16.mxu0 %v1270_v3  ;;  %v25_v14 = vld [vmem:[%s1658_s1 + $0x18] sm:$0xff]  ;;  %v56_v15 = vld [vmem:[%s1658_s1 + $0x110] sm:$0xff]  ;;  %v42_v19 = vld [vmem:[%s1658_s1 + $0xa0] sm:$0xff] }
   0x5   :  { %v57_v16 = vld [vmem:[%s1658_s1 + $0x118] sm:$0xff]  ;;  %1011 = vmatpush3.bf16.msra.mxu0 %v1282_v8  ;;  %v1309_v17 = vpack.c.bf16 %v25_v14, %v24_v12  ;;  %v43_v20 = vld [vmem:[%s1658_s1 + $0xa8] sm:$0xff]  ;;  %v26_v21 = vld [vmem:[%s1658_s1 + $0x20] sm:$0xff]  ;;  %v1391_v49 = vsub.s32 %v82_v38, %v84_v39 }
   0x6   :  { %1042 = vmatpush1.bf16.msra.mxu1 %v1284_v9  ;;  %v1311_v18 = vpack.c.bf16 %v57_v16, %v56_v15  ;;  %1013 = vmatprep.subr.bf16.mxu0 %v1296_v13  ;;  %v1324_v22 = vpack.c.bf16 %v43_v20, %v42_v19  ;;  %v27_v23 = vld [vmem:[%s1658_s1 + $0x28] sm:$0xff]  ;;  %v58_v24 = vld [vmem:[%s1658_s1 + $0x120] sm:$0xff]  ;;  %v44_v29 = vld [vmem:[%s1658_s1 + $0xb0] sm:$0xff] }
   0x7   :  { %1043 = vmatprep.subr.bf16.mxu1 %v1226_v4  ;;  %v59_v25 = vld [vmem:[%s1658_s1 + $0x128] sm:$0xff]  ;;  %v45_v30 = vld [vmem:[%s1658_s1 + $0xb8] sm:$0xff]  ;;  %v1343_v31 = vpack.c.bf16 %v27_v23, %v26_v21  ;;  %v28_v33 = vld [vmem:[%s1658_s1 + $0x30] sm:$0xff] }
   0x8   :  { %v1345_v32 = vpack.c.bf16 %v59_v25, %v58_v24  ;;  %v1352_v34 = vpack.c.bf16 %v45_v30, %v44_v29  ;;  %v29_v35 = vld [vmem:[%s1658_s1 + $0x38] sm:$0xff]  ;;  %v60_v36 = vld [vmem:[%s1658_s1 + $0x130] sm:$0xff]  ;;  %v46_v40 = vld [vmem:[%s1658_s1 + $0xc0] sm:$0xff] }
   0x9   :  { %1015 = vmatpush3.bf16.msra.mxu0 %v1309_v17  ;;  %v61_v37 = vld [vmem:[%s1658_s1 + $0x138] sm:$0xff]  ;;  %v47_v41 = vld [vmem:[%s1658_s1 + $0xc8] sm:$0xff]  ;;  %v1371_v42 = vpack.c.bf16 %v29_v35, %v28_v33  ;;  %v30_v44 = vld [vmem:[%s1658_s1 + $0x40] sm:$0xff] }
   0xa   :  { %1045 = vmatpush1.bf16.msra.mxu1 %v1311_v18  ;;  %1017 = vmatprep.subr.bf16.mxu0 %v1324_v22  ;;  %v1373_v43 = vpack.c.bf16 %v61_v37, %v60_v36  ;;  %v1380_v45 = vpack.c.bf16 %v47_v41, %v46_v40  ;;  %v31_v46 = vld [vmem:[%s1658_s1 + $0x48] sm:$0xff]  ;;  %v62_v47 = vld [vmem:[%s1658_s1 + $0x140] sm:$0xff]  ;;  %v48_v50 = vld [vmem:[%s1658_s1 + $0xd0] sm:$0xff] }
   0xb   :  { %1046 = vmatprep.subr.bf16.mxu1 %v1226_v4  ;;  %v63_v48 = vld [vmem:[%s1658_s1 + $0x148] sm:$0xff]  ;;  %v49_v51 = vld [vmem:[%s1658_s1 + $0xd8] sm:$0xff]  ;;  %v1401_v52 = vpack.c.bf16 %v31_v46, %v30_v44  ;;  %v32_v54 = vld [vmem:[%s1658_s1 + $0x50] sm:$0xff] }
   0xc   :  { %v1403_v53 = vpack.c.bf16 %v63_v48, %v62_v47  ;;  %v33_v55 = vld [vmem:[%s1658_s1 + $0x58] sm:$0xff]  ;;  %v21_v56 = vld [vmem:[%s1657_s0] sm:$0xff]  ;;  %v1416_v57 = vpack.c.bf16 %v49_v51, %v48_v50  ;;  %v64_v58 = vld [vmem:[%s1658_s1 + $0x150] sm:$0xff] }
   0xd   :  { %1019 = vmatpush3.bf16.msra.mxu0 %v1343_v31  ;;  %v65_v59 = vld [vmem:[%s1658_s1 + $0x158] sm:$0xff]  ;;  %v79_v60 = vcombine.high %v21_v56, %v21_v56  ;;  %v86_v61 = vrot.slane %v21_v56, %v1391_v49 }
   0xe   :  { %1048 = vmatpush1.bf16.msra.mxu1 %v1345_v32  ;;  %1021 = vmatprep.subr.bf16.mxu0 %v1352_v34 }
   0xf   :  { %1049 = vmatprep.subr.bf16.mxu1 %v1226_v4 }
  0x11   :  { %1023 = vmatpush3.bf16.msra.mxu0 %v1371_v42 }
  0x12   :  { %1051 = vmatpush1.bf16.msra.mxu1 %v1373_v43  ;;  %1025 = vmatprep.subr.bf16.mxu0 %v1380_v45 }
  0x13   :  { %1052 = vmatprep.subr.bf16.mxu1 %v1226_v4 }
  0x14   :  { %10 = vsyncpa [#allocation3], 0  ;;  %v50_v62 = vld [vmem:[%s1658_s1 + $0xe0] sm:$0xff]  ;;  %v51_v63 = vld [vmem:[%s1658_s1 + $0xe8] sm:$0xff]  ;;  %v94_v0 = vcombine.high %v86_v61, %v86_v61  ;;  %v93_v1 = vrot.slane %v79_v60, %v1391_v49  ;;  %v1434_v2 = vpack.c.bf16 %v33_v55, %v32_v54  ;;  %v1436_v5 = vpack.c.bf16 %v65_v59, %v64_v58  ;;  %s1230_s20 = smov [#allocation2]  }
  0x15   :  { %1027 = vmatpush3.bf16.msra.mxu0 %v1401_v52  ;;  %v34_v6 = vld [vmem:[%s1658_s1 + $0x60] sm:$0xff]  ;;  %vm99_vm0 = vcmask 7168   ;;  %v1443_v7 = vpack.c.bf16 %v51_v63, %v50_v62  ;;  %v35_v10 = vld [vmem:[%s1658_s1 + $0x68] sm:$0xff]  ;;  %v52_v15 = vld [vmem:[%s1658_s1 + $0xf0] sm:$0xff]  ;;  %v1228_v36 = vmov 0.0   ;;  %vm102_vm1 = vcmask 1040384  }
  0x16   :  { %1054 = vmatpush1.bf16.msra.mxu1 %v1403_v53  ;;  %1029 = vmatprep.subr.bf16.mxu0 %v1416_v57  ;;  %v66_v11 = vld [vmem:[%s1658_s1 + $0x160] sm:$0xff]  ;;  %v67_v12 = vld [vmem:[%s1658_s1 + $0x168] sm:$0xff]  ;;  %v95_v14 = vcombine.high %v93_v1, %v93_v1  ;;  %v53_v16 = vld [vmem:[%s1658_s1 + $0xf8] sm:$0xff]  ;;  %v1463_v19 = vpack.c.bf16 %v35_v10, %v34_v6  ;;  %vm1229_vm2 = vmmov 0   ;;  %vm420_vm3 = vcmask 261120   ;;  %s826_s21 = sshll.u32 %s1230_s20, 4  ;;  %s827_s21 = int_to_ptr.vmem [resolvable:$true] %s826_s21 }
  0x17   :  { %1055 = vmatprep.subr.bf16.mxu1 %v1226_v4  ;;  %170 = vmatprep.mubr.f32.mxu0 %v94_v0  ;;  %v1465_v20 = vpack.c.bf16 %v67_v12, %v66_v11  ;;  %v36_v21 = vld [vmem:[%s1658_s1 + $0x70] sm:$0xff]  ;;  %v1472_v23 = vpack.c.bf16 %v53_v16, %v52_v15  ;;  %v37_v24 = vld [vmem:[%s1658_s1 + $0x78] sm:$0xff]  ;;  %v837_v27 = vld [vmem:[%s1657_s0 + $0x8] sm:$0xff]  ;;  %s1202_s22 = scalar_lea.vmem %s827_s21, 32  ;;  %p1207_p1 = scmp.lt.s32.totalorder %s827_s21, %s827_s21 }
  0x18   :  { %836 = vmatprep.mubr.msk.f32.mxu1 %vm99_vm0, %v95_v14  ;;  %v68_v25 = vld [vmem:[%s1658_s1 + $0x170] sm:$0xff]  ;;  %v69_v26 = vld [vmem:[%s1658_s1 + $0x178] sm:$0xff]  ;;  %v1488_v28 = vpack.c.bf16 %v37_v24, %v36_v21  ;;  %v253_v30 = vcombine.high %v837_v27, %v837_v27  ;;  %v260_v33 = vrot.slane %v837_v27, %v1391_v49  ;;  %v1503_v37 = vld [vmem:[%s1658_s1 + $0x180] sm:$0x1]  ;;  %p1203_p0 = scmp.ne.s32.totalorder %s827_s21, %s1202_s22  ;;  %p1208_p2 = scmp.lt.s32.totalorder %s1202_s22, %s1202_s22 }
  0x19   :  { %1031 = vmatpush3.bf16.msra.mxu0 %v1434_v2  ;;  %v1490_v29 = vpack.c.bf16 %v69_v26, %v68_v25  ;;  %v246_v40 = vld [vmem:[%s1660_s3] sm:$0xff]  ;;  %v247_v41 = vld [vmem:[%s1660_s3 + $0x8] sm:$0xff]  ;;  %v248_v46 = vld [vmem:[%s1660_s3 + $0x10] sm:$0xff] }
  0x1a   :  { %1057 = vmatpush1.bf16.msra.mxu1 %v1436_v5  ;;  %1033 = vmatprep.subr.bf16.mxu0 %v1443_v7  ;;  %v267_v35 = vrot.slane %v253_v30, %v1391_v49  ;;  %v268_v38 = vcombine.high %v260_v33, %v260_v33  ;;  %v1127_v44 = vpack.c.bf16 %v247_v41, %v246_v40  ;;  %v249_v47 = vld [vmem:[%s1660_s3 + $0x18] sm:$0xff]  ;;  %v840_v50 = vld [vmem:[%s1660_s3 + $0x20] sm:$0xff]  ;;  %v841_v51 = vld [vmem:[%s1660_s3 + $0x28] sm:$0xff]  ;;  %p1209_p3 = por %p1208_p2, %p1207_p1 }
  0x1b   :  { %1058 = vmatprep.subr.bf16.mxu1 %v1226_v4  ;;  %v1130_v48 = vpack.c.bf16 %v249_v47, %v248_v46  ;;  %v1121_v54 = vpack.c.bf16 %v841_v51, %v840_v50  ;;  %v842_v55 = vld [vmem:[%s1660_s3 + $0x30] sm:$0xff]  ;;  %v843_v56 = vld [vmem:[%s1660_s3 + $0x38] sm:$0xff]  ;;  %v1582_v63 = vld [vmem:[%s1659_s2] ss:$0 sm:$0xff] }
  0x1c   :  { %v269_v39 = vcombine.high %v267_v35, %v267_v35  ;;  %v1124_v58 = vpack.c.bf16 %v843_v56, %v842_v55  ;;  %v846_v59 = vld [vmem:[%s1657_s0 + $0x10] sm:$0xff]  ;;  %v854_v25 = vld [vmem:[%s1661_s4] ss:$0 sm:$0xff]  ;;  %p1210_p4 = pnand %p1209_p3, %p1203_p0 }
  0x1d   :  { %1035 = vmatpush3.bf16.msra.mxu0 %v1463_v19  ;;  %v570_v60 = vcombine.high %v846_v59, %v846_v59 }
  0x1e   :  { %1060 = vmatpush1.bf16.msra.mxu1 %v1465_v20  ;;  %1037 = vmatprep.subr.bf16.mxu0 %v1472_v23 }
  0x1f   :  { %1061 = vmatprep.subr.bf16.mxu1 %v1226_v4  ;;  %v584_v0 = vrot.slane %v570_v60, %v1391_v49 }
  0x21   :  { %1039 = vmatpush3.bf16.msra.mxu0 %v1488_v28 }
  0x22   :  { %1063 = vmatpush1.bf16.msra.mxu1 %v1490_v29  ;;  %1065 = vmatprep.subr.bf16.mxu0 %v1270_v3 }
  0x23   :  { %208 = vmatprep.subr.mxu1 %v1228_v36 }
  0x24   :  { %171 = vmatmul.mubr.f32.vlgmr.msra.gmra.mrb[0].mxu0 %v86_v61 }
  0x25   :  { %1067 = vmatpush3.bf16.msra.mxu0 %v1282_v8  ;;  %339 = vmatprep.mubr.f32.mxu0 %v268_v38 }
  0x26   :  { %835 = vmatpush1.msk.msra.mxu1 %vm102_vm1, %v1503_v37  ;;  %1069 = vmatprep.subr.bf16.mxu0 %v1296_v13 }
  0x27   :  { %1096 = vmatprep.subr.bf16.mxu1 %v1226_v4  ;;  %241 = vmatmul.mubr.f32.vlgmr.msra.gmra.mrb[0].mxu1 %v93_v1 }
  0x28   :  { %1098 = vmatpush1.bf16.msra.mxu1 %v1284_v9  ;;  %839 = vmatprep.mubr.msk.f32.mxu1 %vm99_vm0, %v269_v39 }
  0x29   :  { %1099 = vmatprep.subr.bf16.mxu1 %v1226_v4  ;;  %1071 = vmatpush3.bf16.msra.mxu0 %v1309_v17 }
  0x2a   :  { %1073 = vmatprep.subr.bf16.mxu0 %v1324_v22 }
  0x2c   :  { %1101 = vmatpush1.bf16.msra.mxu1 %v1311_v18 }
  0x2d   :  { %1102 = vmatprep.subr.bf16.mxu1 %v1226_v4  ;;  %1075 = vmatpush3.bf16.msra.mxu0 %v1343_v31 }
  0x2e   :  { %1077 = vmatprep.subr.bf16.mxu0 %v1352_v34 }
  0x30   :  { %1104 = vmatpush1.bf16.msra.mxu1 %v1345_v32 }
  0x31   :  { %1105 = vmatprep.subr.bf16.mxu1 %v1226_v4  ;;  %1079 = vmatpush3.bf16.msra.mxu0 %v1371_v42 }
  0x32   :  { %1081 = vmatprep.subr.bf16.mxu0 %v1380_v45 }
  0x34   :  { %1107 = vmatpush1.bf16.msra.mxu1 %v1373_v43 }
  0x35   :  { %1108 = vmatprep.subr.bf16.mxu1 %v1226_v4  ;;  %1083 = vmatpush3.bf16.msra.mxu0 %v1401_v52 }
  0x36   :  { %1085 = vmatprep.subr.bf16.mxu0 %v1416_v57 }
  0x38   :  { %1110 = vmatpush1.bf16.msra.mxu1 %v1403_v53 }
  0x39   :  { %1111 = vmatprep.subr.bf16.mxu1 %v1226_v4  ;;  %1087 = vmatpush3.bf16.msra.mxu0 %v1434_v2 }
  0x3a   :  { %1089 = vmatprep.subr.bf16.mxu0 %v1443_v7 }
  0x3c   :  { %1113 = vmatpush1.bf16.msra.mxu1 %v1436_v5 }
  0x3d   :  { %1114 = vmatprep.subr.bf16.mxu1 %v1226_v4  ;;  %1091 = vmatpush3.bf16.msra.mxu0 %v1463_v19 }
  0x3e   :  { %1093 = vmatprep.subr.bf16.mxu0 %v1472_v23 }
  0x40   :  { %1116 = vmatpush1.bf16.msra.mxu1 %v1465_v20 }
  0x41   :  { %1117 = vmatprep.subr.bf16.mxu1 %v1226_v4  ;;  %1095 = vmatpush3.bf16.msra.mxu0 %v1488_v28 }
  0x42   :  { %1120 = vmatprep.subr.bf16.mxu0 %v1226_v4 }
  0x44   :  { %1119 = vmatpush1.bf16.msra.mxu1 %v1490_v29  ;;  %340 = vmatmul.mubr.f32.vlgmr.msra.gmra.mrb[2].mxu0 %v260_v33 }
  0x45   :  { %377 = vmatprep.subr.mxu1 %v1228_v36  ;;  %983 = vmatprep.mubr.msk.f32.mxu0 %vm1229_vm2, %v1228_v36 }
  0x46   :  { %1122 = vmatpush3.bf16.msra.mxu0 %v1121_v54 }
  0x47   :  { %1123 = vmatprep.subr.bf16.mxu0 %v1226_v4 }
  0x48   :  { %838 = vmatpush1.msk.msra.mxu1 %vm102_vm1, %v1503_v37 }
  0x49   :  { %410 = vmatmul.mubr.f32.vlgmr.msra.gmra.mrb[2].mxu1 %v267_v35  ;;  %1126 = vmatprep.subr.bf16.mxu1 %v1226_v4 }
  0x4a   :  { %1128 = vmatpush3.bf16.msra.mxu1 %v1127_v44  ;;  %994 = vmatprep.mubr.msk.f32.mxu1 %vm1229_vm2, %v1228_v36 }
  0x4b   :  { %1129 = vmatprep.subr.bf16.mxu1 %v1226_v4  ;;  %1125 = vmatpush3.bf16.msra.mxu0 %v1124_v58 }
  0x4c   :  { %1133 = vmatprep.subr.bf16.mxu0 %v1270_v3  ;;  %v586_v3 = vcombine.high %v584_v0, %v584_v0 }
  0x4e   :  { %1131 = vmatpush3.bf16.msra.mxu1 %v1130_v48 }
  0x4f   :  { %1164 = vmatprep.subr.bf16.mxu1 %v1226_v4 }
  0xf7   :  { %v887_v61 = vpop.f32.mrb[0].mxu0 }
  0xf8   :  { %v888_v62 = vpop.f32.mrb[1].mxu0 }
  0xf9   :  { %v889_v1 = vadd.f32 %v888_v62, %v887_v61 }
  0xfa   :  { %v242_v6 = vpop.f32.mrb[0].mxu1 }
  0xfb   :  { %v244_v10 = vpop.f32.mrb[1].mxu1  ;;  %v173_v11 = vadd.f32 %v889_v1, %v1582_v63 }
  0xfd   :  { %v243_v12 = vadd.f32 %v242_v6, %v173_v11 }
  0xff   :  { %995 = vmatmul.mubr.msk.f32.vlgmr.msra.gmra.mrb[4].mxu1 %vm420_vm3, %v243_v12 }
 0x100   :  { %1166 = vmatpush1.bf16.msra.mxu1 %v1284_v9  ;;  %848 = vmatprep.mubr.msk.f32.mxu1 %vm99_vm0, %v586_v3 }
 0x101   :  { %1167 = vmatprep.subr.bf16.mxu1 %v1226_v4 }
 0x104   :  { %1169 = vmatpush1.bf16.msra.mxu1 %v1311_v18 }
 0x105   :  { %1170 = vmatprep.subr.bf16.mxu1 %v1226_v4 }
 0x108   :  { %1172 = vmatpush1.bf16.msra.mxu1 %v1345_v32  ;;  %v577_v32 = vrot.slane %v846_v59, %v1391_v49 }
 0x109   :  { %1173 = vmatprep.subr.bf16.mxu1 %v1226_v4 }
 0x10c   :  { %1175 = vmatpush1.bf16.msra.mxu1 %v1373_v43 }
 0x10d   :  { %1176 = vmatprep.subr.bf16.mxu1 %v1226_v4 }
 0x110   :  { %1178 = vmatpush1.bf16.msra.mxu1 %v1403_v53  ;;  %v585_v53 = vcombine.high %v577_v32, %v577_v32 }
 0x111   :  { %1179 = vmatprep.subr.bf16.mxu1 %v1226_v4 }
 0x114   :  { %1181 = vmatpush1.bf16.msra.mxu1 %v1436_v5 }
 0x115   :  { %1182 = vmatprep.subr.bf16.mxu1 %v1226_v4 }
 0x117   :  { %v922_v9 = vpop.f32.mrb[2].mxu0 }
 0x118   :  { %v923_v18 = vpop.f32.mrb[3].mxu0  ;;  %1184 = vmatpush1.bf16.msra.mxu1 %v1465_v20 }
 0x119   :  { %v924_v14 = vadd.f32 %v923_v18, %v922_v9  ;;  %1185 = vmatprep.subr.bf16.mxu1 %v1226_v4 }
 0x11b   :  { %v342_v43 = vadd.f32 %v924_v14, %v1582_v63 }
 0x11c   :  { %v411_v15 = vpop.f32.mrb[2].mxu1  ;;  %1187 = vmatpush1.bf16.msra.mxu1 %v1490_v29 }
 0x11d   :  { %v413_v16 = vpop.f32.mrb[3].mxu1  ;;  %v412_v21 = vadd.f32 %v411_v15, %v342_v43  ;;  %694 = vmatprep.subr.mxu1 %v1228_v36 }
 0x11f   :  { %984 = vmatmul.mubr.msk.f32.vlgmr.msra.gmra.mrb[4].mxu0 %vm420_vm3, %v412_v21 }
 0x120   :  { %1135 = vmatpush3.bf16.msra.mxu0 %v1282_v8  ;;  %656 = vmatprep.mubr.f32.mxu0 %v585_v53  ;;  %v849_v8 = vld [vmem:[%s1660_s3 + $0x40] sm:$0xff] }
 0x121   :  { %1137 = vmatprep.subr.bf16.mxu0 %v1296_v13  ;;  %847 = vmatpush1.msk.msra.mxu1 %vm102_vm1, %v1503_v37  ;;  %v850_v13 = vld [vmem:[%s1660_s3 + $0x48] sm:$0xff] }
 0x122   :  { %727 = vmatmul.mubr.f32.vlgmr.msra.gmra.mrb[6].mxu1 %v584_v0 }
 0x124   :  { %1139 = vmatpush3.bf16.msra.mxu0 %v1309_v17  ;;  %v1189_v17 = vpack.c.bf16 %v850_v13, %v849_v8 }
 0x125   :  { %1141 = vmatprep.subr.bf16.mxu0 %v1324_v22  ;;  %v851_v22 = vld [vmem:[%s1660_s3 + $0x50] sm:$0xff] }
 0x128   :  { %1143 = vmatpush3.bf16.msra.mxu0 %v1343_v31  ;;  %v852_v31 = vld [vmem:[%s1660_s3 + $0x58] sm:$0xff] }
 0x129   :  { %1145 = vmatprep.subr.bf16.mxu0 %v1352_v34  ;;  %v1192_v34 = vpack.c.bf16 %v852_v31, %v851_v22 }
 0x12c   :  { %1147 = vmatpush3.bf16.msra.mxu0 %v1371_v42 }
 0x12d   :  { %1149 = vmatprep.subr.bf16.mxu0 %v1380_v45 }
 0x130   :  { %1151 = vmatpush3.bf16.msra.mxu0 %v1401_v52 }
 0x131   :  { %1153 = vmatprep.subr.bf16.mxu0 %v1416_v57 }
 0x134   :  { %1155 = vmatpush3.bf16.msra.mxu0 %v1434_v2 }
 0x135   :  { %1157 = vmatprep.subr.bf16.mxu0 %v1443_v7 }
 0x138   :  { %1159 = vmatpush3.bf16.msra.mxu0 %v1463_v19 }
 0x139   :  { %1161 = vmatprep.subr.bf16.mxu0 %v1472_v23 }
 0x13c   :  { %1163 = vmatpush3.bf16.msra.mxu0 %v1488_v28 }
 0x13d   :  { %1188 = vmatprep.subr.bf16.mxu0 %v1226_v4 }
 0x13f   :  { %657 = vmatmul.mubr.f32.vlgmr.msra.gmra.mrb[6].mxu0 %v577_v32 }
 0x140   :  { %1005 = vmatprep.mubr.msk.f32.mxu0 %vm1229_vm2, %v1228_v36  ;;  %1190 = vmatpush3.bf16.msra.mxu0 %v1189_v17 }
 0x141   :  { %1191 = vmatprep.subr.bf16.mxu0 %v1226_v4 }
 0x144   :  { %1193 = vmatpush3.bf16.msra.mxu0 %v1192_v34 }
 0x1d2   :  { %v563_v42 = vpop.f32.mrb[4].mxu1 }
 0x1d3   :  { %v996_v45 = vpop.f32.mrb[5].mxu1 }
 0x1f2   :  { %v490_v49 = vpop.f32.mrb[4].mxu0 }
 0x1f3   :  { %v564_v52 = vadd.f32 %v563_v42, %v490_v49  ;;  %v985_v57 = vpop.f32.mrb[5].mxu0 }
 0x1f5   :  { %v728_v2 = vpop.f32.mrb[6].mxu1 }
 0x1f6   :  { %v730_v5 = vpop.f32.mrb[7].mxu1 }
 0x212   :  { %v967_v7 = vpop.f32.mrb[6].mxu0 }
 0x213   :  { %v968_v19 = vpop.f32.mrb[7].mxu0 }
 0x214   :  { %v969_v4 = vadd.f32 %v968_v19, %v967_v7 }
 0x216   :  { %v659_v20 = vadd.f32 %v969_v4, %v1582_v63 }
 0x218   :  { %v729_v23 = vadd.f32 %v728_v2, %v659_v20 }
 0x21a   :  { %1006 = vmatmul.mubr.msk.f32.vlgmr.msra.gmra.mrb[8].mxu0 %vm420_vm3, %v729_v23 }
 0x2ed   :  { %v806_v24 = vpop.f32.mrb[8].mxu0 }
 0x2ee   :  { %v810_v26 = vadd.f32 %v806_v24, %v564_v52  ;;  %v1007_v27 = vpop.f32.mrb[9].mxu0 }
 0x2f0   :  { %v818_v28 = vadd.f32 %v854_v25, %v810_v26 }
 0x2f2   :  { %819 = vst [vmem:[#allocation2] sm:$0x3] %v818_v28 }
 0x2f3   :  { %1213 = shalt.err (!%p1210_p4)
}
 0x2f4   :  { %s1214_s25 = scalar_lea.hbm %s1662_s5, 32 }
 0x2f5   :  { %p1215_p5 = scmp.ne.s32.totalorder %s1662_s5, %s1214_s25  ;;  %p1218_p6 = scmp.lt.u32.totalorder %s1214_s25, %s1662_s5 }
 0x2f7   :  { %p1220_p7 = pnand %p1218_p6, %p1215_p5 }
 0x2f9   :  { %1223 = shalt.err (!%p1220_p7)
}
 0x2fa   :  { %829 = dma.vmem_to_hbm [thread:$0]  %s827_s21, 32, %s1662_s5, [#allocation3]  }
 0x2fb   :  { %1224 = dma.done.wait [#allocation3], 32  }
 0x2fc   :  { %1225 = vsyncadd [#allocation3], 4294967264 }
 0x2fd   :  { %833 = vsyncpa [#allocation3], 1 }

</bundles_post_ra>
